<compile_context>
chip_gen: v7x
topology: tpu7x:2x2x1
jax: 0.10.0
libtpu: 0.0.40
codegen_flags: <defaults>
</compile_context>

<pallas_src>
import functools

import jax
import jax.numpy as jnp
from jax.experimental import pallas as pl
from jax.experimental.pallas import tpu as pltpu


def _round_up(n, m):
    return (n + m - 1) // m * m


def _round_down(n, m):
    return n // m * m


def _value_net_kernel(x_ref, w1_ref, b1_ref, w2_ref, b2_ref, w3_ref, b3_ref,
                      o_ref, *, bf16_tanh):
    # x_ref: (TB, state_dim) f32, natural layout.  Transpose in-kernel so batch
    # lands on the lane axis for the rest of the pipeline.
    xT = x_ref[...].T                                            # (state_dim, TB) f32

    # input_layer + tanh: (h0, state_dim) @ (state_dim, TB), f32 MXU (slack), f32 acc.
    h = jnp.dot(w1_ref[...], xT, preferred_element_type=jnp.float32)
    h = h + b1_ref[...]                                          # f32 bias add (VPU)
    if bf16_tanh:
        h = jnp.tanh(h.astype(jnp.bfloat16))                     # bf16 EUP (v6e/v7x)
    else:
        h = jnp.tanh(h).astype(jnp.bfloat16)                     # f32 EUP (v5e)

    # hidden_layers[0] + tanh: (h1, h0) bf16 @ (h0, TB) bf16 -> f32 accumulate.
    h = jnp.dot(w2_ref[...], h, preferred_element_type=jnp.float32)
    h = h + b2_ref[...]
    if bf16_tanh:
        h = jnp.tanh(h.astype(jnp.bfloat16)).astype(jnp.float32)
    else:
        h = jnp.tanh(h)                                          # (h1, TB) f32

    # output_layer (out_features == 1): VPU broadcast-multiply + sublane reduce
    # instead of a 1-column MXU matmul.  Lane-dense (1, TB) result row.
    out_row = jnp.sum(h * w3_ref[...], axis=0, keepdims=True)    # (1, TB) f32
    o_ref[...] = (out_row + b3_ref[0, 0]).astype(o_ref.dtype)


def _choose_batch_tile(batch, batch_tile):
    """Lane-aligned tile: >=2 grid steps when possible, padding waste bounded."""
    padded128 = _round_up(batch, 128)
    # Cap so mid-size batches still produce >= 2 grid steps (v7x megacore).
    tb = min(batch_tile, max(128, _round_down(padded128 // 2, 128)))
    # Shrink (in 128 steps) until padded-row waste is < ~15%.
    while tb > 128:
        padded_b = _round_up(batch, tb)
        if (padded_b - batch) * 100 <= 15 * padded_b:
            break
        tb -= 128
    return tb


@functools.partial(jax.jit, static_argnames=("batch_tile", "bf16_tanh"))
def _value_network_forward_impl(x, params, *, batch_tile, bf16_tanh):
    B, state_dim = x.shape
    w1, b1 = params["W1"], params["b1"]     # (h0, state_dim), (h0,)
    w2, b2 = params["W2"], params["b2"]     # (h1, h0),        (h1,)
    w3, b3 = params["W3"], params["b3"]     # (1, h1),         (1,)
    h0, h1 = w1.shape[0], w2.shape[0]

    assert batch_tile % 128 == 0, "batch_tile must be a multiple of 128"
    tb = _choose_batch_tile(B, batch_tile)
    padded_b = _round_up(B, tb)
    grid = (padded_b // tb,)

    # Natural-layout f32 input; only a (usually elided) zero-pad on the batch axis.
    x_pad = jnp.pad(x, ((0, padded_b - B), (0, 0)))               # (padded_b, state_dim)

    w2_bf = w2.astype(jnp.bfloat16)
    b1_col = b1.reshape(h0, 1)
    b2_col = b2.reshape(h1, 1)
    w3_col = w3.reshape(h1, 1)                                    # f32 (VPU path)
    b3_2d = b3.reshape(1, 1)                                      # scalar -> SMEM

    rep = lambda shape: pl.BlockSpec(shape, lambda i: (0,) * len(shape))

    out = pl.pallas_call(
        functools.partial(_value_net_kernel, bf16_tanh=bf16_tanh),
        out_shape=jax.ShapeDtypeStruct((1, padded_b), jnp.float32),
        grid_spec=pltpu.PrefetchScalarGridSpec(
            num_scalar_prefetch=0,
            grid=grid,
            in_specs=[
                pl.BlockSpec((tb, state_dim), lambda i: (i, 0)),    # x tile (natural)
                rep((h0, state_dim)),                               # W1 (f32)
                rep((h0, 1)),                                       # b1
                rep((h1, h0)),                                      # W2 (bf16)
                rep((h1, 1)),                                       # b2
                rep((h1, 1)),                                       # W3 (column, f32)
                pl.BlockSpec(memory_space=pltpu.MemorySpace.SMEM),  # b3 scalar
            ],
            out_specs=pl.BlockSpec((1, tb), lambda i: (0, i)),
        ),
        compiler_params=pltpu.CompilerParams(
            dimension_semantics=("parallel",),
            vmem_limit_bytes=32 * 1024 * 1024,
        ),
    )(x_pad, w1, b1_col, w2_bf, b2_col, w3_col, b3_2d)

    return out[0, :B].reshape(B, 1)


def value_network_forward(x, params, *, batch_tile=1024, bf16_tanh=None):
    """x: (B, state_dim) float32.  params: PyTorch-layout W (out,in), b (out,)."""
    if bf16_tanh is None:
        kind = jax.devices()[0].device_kind.lower()
        # bf16 EUP only on v6e / v7x; keep f32 tanh on v5e and older.
        bf16_tanh = ("v6" in kind) or ("v7" in kind)
    return _value_network_forward_impl(x, params, batch_tile=batch_tile,
                                       bf16_tanh=bool(bf16_tanh))


def init_params(key, state_dim, hidden_dims=(64, 64)):
    """PyTorch-style uniform fan-in init, PyTorch layout: W is (out_features, in_features)."""
    dims = (state_dim,) + tuple(hidden_dims) + (1,)
    params = {}
    names = [("W1", "b1"), ("W2", "b2"), ("W3", "b3")]
    for idx, (wn, bn) in enumerate(names):
        fan_in, fan_out = dims[idx], dims[idx + 1]
        key, kw, kb = jax.random.split(key, 3)
        bound = 1.0 / jnp.sqrt(fan_in)
        params[wn] = jax.random.uniform(kw, (fan_out, fan_in), jnp.float32,
                                        -bound, bound)
        params[bn] = jax.random.uniform(kb, (fan_out,), jnp.float32,
                                        -bound, bound)
    return params


def reference_forward(x, params):
    """Pure-JAX f32 reference matching the PyTorch module (y = x @ W.T + b)."""
    h = jnp.tanh(x @ params["W1"].T + params["b1"])
    h = jnp.tanh(h @ params["W2"].T + params["b2"])
    return h @ params["W3"].T + params["b3"]


if __name__ == "__main__":
    key = jax.random.PRNGKey(0)
    batch, state_dim = 8, 16
    hidden_dims = (64, 64)

    kx, kp = jax.random.split(key)
    x = jax.random.normal(kx, (batch, state_dim), jnp.float32)
    params = init_params(kp, state_dim, hidden_dims)

    out = value_network_forward(x, params)
    out = jax.block_until_ready(out)

    ref = reference_forward(x, params)
    assert out.shape == (batch, 1), out.shape
    # bf16 second-layer operands (+ bf16 tanh on v6e/v7x) with f32 accumulation
    # -> relaxed tolerance vs the pure-f32 reference.
    err = float(jnp.max(jnp.abs(out - ref)))
    assert jnp.allclose(out, ref, atol=2e-2, rtol=2e-2), f"mismatch, max abs err={err}"
    print("KERNEL_OK")
</pallas_src>

<mosaic_0001>
module attributes {stable_mosaic.version = 11 : i64} {
  func.func @_value_net_kernel(%arg0: i32, %arg1: memref<128x16xf32, #tpu.memory_space<vmem>>, %arg2: memref<64x16xf32, #tpu.memory_space<vmem>>, %arg3: memref<64x1xf32, #tpu.memory_space<vmem>>, %arg4: memref<64x64xbf16, #tpu.memory_space<vmem>>, %arg5: memref<64x1xf32, #tpu.memory_space<vmem>>, %arg6: memref<64x1xf32, #tpu.memory_space<vmem>>, %arg7: memref<1x1xf32, #tpu.memory_space<smem>>, %arg8: memref<1x128xf32, #tpu.memory_space<vmem>>) attributes {dimension_semantics = [#tpu.dimension_semantics<parallel>], iteration_bounds = array<i64: 1>, scalar_prefetch = 0 : i64, scratch_operands = 0 : i64, tpu.core_type = #tpu.core_type<tc>, window_params = [{transform_indices = @transform_0, window_bounds = array<i64: 128, 16>}, {pipeline_mode = #tpu.pipeline_mode<synchronous>, transform_indices = @transform_1, window_bounds = array<i64: 64, 16>}, {pipeline_mode = #tpu.pipeline_mode<synchronous>, transform_indices = @transform_2, window_bounds = array<i64: 64, 1>}, {pipeline_mode = #tpu.pipeline_mode<synchronous>, transform_indices = @transform_3, window_bounds = array<i64: 64, 64>}, {pipeline_mode = #tpu.pipeline_mode<synchronous>, transform_indices = @transform_4, window_bounds = array<i64: 64, 1>}, {pipeline_mode = #tpu.pipeline_mode<synchronous>, transform_indices = @transform_5, window_bounds = array<i64: 64, 1>}, {transform_indices = @transform_6, window_bounds = array<i64: 1, 1>}, {transform_indices = @transform_7, window_bounds = array<i64: 1, 128>}]} {
    %c0 = arith.constant 0 : index
    %c0_0 = arith.constant 0 : index
    %0 = vector.load %arg1[%c0, %c0_0] : memref<128x16xf32, #tpu.memory_space<vmem>>, vector<128x16xf32>
    %1 = tpu.transpose %0, [1, 0] : vector<128x16xf32> -> vector<16x128xf32>
    %c0_1 = arith.constant 0 : index
    %c0_2 = arith.constant 0 : index
    %2 = vector.load %arg2[%c0_1, %c0_2] : memref<64x16xf32, #tpu.memory_space<vmem>>, vector<64x16xf32>
    %cst = arith.constant dense<0.000000e+00> : vector<64x128xf32>
    %3 = tpu.matmul %2, %1, %cst {dimension_numbers = #tpu.dot_dimension_numbers<[1], [0], [0], [1], [0, 0, 1, 1], [], []>} : vector<64x16xf32>, vector<16x128xf32>, vector<64x128xf32> -> vector<64x128xf32>
    %c0_3 = arith.constant 0 : index
    %c0_4 = arith.constant 0 : index
    %4 = vector.load %arg3[%c0_3, %c0_4] : memref<64x1xf32, #tpu.memory_space<vmem>>, vector<64x1xf32>
    %5 = vector.broadcast %4 : vector<64x1xf32> to vector<64x128xf32>
    %6 = arith.addf %3, %5 : vector<64x128xf32>
    %7 = math.tanh %6 : vector<64x128xf32>
    %8 = arith.truncf %7 : vector<64x128xf32> to vector<64x128xbf16>
    %c0_5 = arith.constant 0 : index
    %c0_6 = arith.constant 0 : index
    %9 = vector.load %arg4[%c0_5, %c0_6] : memref<64x64xbf16, #tpu.memory_space<vmem>>, vector<64x64xbf16>
    %cst_7 = arith.constant dense<0.000000e+00> : vector<64x128xf32>
    %10 = tpu.matmul %9, %8, %cst_7 {dimension_numbers = #tpu.dot_dimension_numbers<[1], [0], [0], [1], [0, 0, 1, 1], [], []>} : vector<64x64xbf16>, vector<64x128xbf16>, vector<64x128xf32> -> vector<64x128xf32>
    %c0_8 = arith.constant 0 : index
    %c0_9 = arith.constant 0 : index
    %11 = vector.load %arg5[%c0_8, %c0_9] : memref<64x1xf32, #tpu.memory_space<vmem>>, vector<64x1xf32>
    %12 = vector.broadcast %11 : vector<64x1xf32> to vector<64x128xf32>
    %13 = arith.addf %10, %12 : vector<64x128xf32>
    %14 = math.tanh %13 : vector<64x128xf32>
    %c0_10 = arith.constant 0 : index
    %c0_11 = arith.constant 0 : index
    %15 = vector.load %arg6[%c0_10, %c0_11] : memref<64x1xf32, #tpu.memory_space<vmem>>, vector<64x1xf32>
    %16 = vector.broadcast %15 : vector<64x1xf32> to vector<64x128xf32>
    %17 = arith.mulf %14, %16 : vector<64x128xf32>
    %cst_12 = arith.constant dense<0.000000e+00> : vector<128xf32>
    %18 = vector.multi_reduction <add>, %17, %cst_12 [0] : vector<64x128xf32> to vector<128xf32>
    %19 = vector.shape_cast %18 : vector<128xf32> to vector<1x128xf32>
    %c0_13 = arith.constant 0 : index
    %c0_14 = arith.constant 0 : index
    %20 = memref.load %arg7[%c0_13, %c0_14] : memref<1x1xf32, #tpu.memory_space<smem>>
    %21 = vector.broadcast %20 : f32 to vector<1x128xf32>
    %22 = arith.addf %19, %21 : vector<1x128xf32>
    %c0_15 = arith.constant 0 : index
    %c0_16 = arith.constant 0 : index
    %23 = vector.load %arg8[%c0_15, %c0_16] : memref<1x128xf32, #tpu.memory_space<vmem>>, vector<1x128xf32>
    tpu.vector_store %arg8[%c0_15, %c0_16], %22 {strides = array<i32>} : memref<1x128xf32, #tpu.memory_space<vmem>>, vector<1x128xf32>,
    return
  }
  func.func @transform_0(%arg0: i32) -> (i32, i32) {
    %c0_i32 = arith.constant 0 : i32
    %c0_i32_0 = arith.constant 0 : i32
    return %arg0, %c0_i32 : i32, i32
  }
  func.func @transform_1(%arg0: i32) -> (i32, i32) {
    %c0_i32 = arith.constant 0 : i32
    %c0_i32_0 = arith.constant 0 : i32
    %c0_i32_1 = arith.constant 0 : i32
    return %c0_i32, %c0_i32_0 : i32, i32
  }
  func.func @transform_2(%arg0: i32) -> (i32, i32) {
    %c0_i32 = arith.constant 0 : i32
    %c0_i32_0 = arith.constant 0 : i32
    %c0_i32_1 = arith.constant 0 : i32
    return %c0_i32, %c0_i32_0 : i32, i32
  }
  func.func @transform_3(%arg0: i32) -> (i32, i32) {
    %c0_i32 = arith.constant 0 : i32
    %c0_i32_0 = arith.constant 0 : i32
    %c0_i32_1 = arith.constant 0 : i32
    return %c0_i32, %c0_i32_0 : i32, i32
  }
  func.func @transform_4(%arg0: i32) -> (i32, i32) {
    %c0_i32 = arith.constant 0 : i32
    %c0_i32_0 = arith.constant 0 : i32
    %c0_i32_1 = arith.constant 0 : i32
    return %c0_i32, %c0_i32_0 : i32, i32
  }
  func.func @transform_5(%arg0: i32) -> (i32, i32) {
    %c0_i32 = arith.constant 0 : i32
    %c0_i32_0 = arith.constant 0 : i32
    %c0_i32_1 = arith.constant 0 : i32
    return %c0_i32, %c0_i32_0 : i32, i32
  }
  func.func @transform_6(%arg0: i32) -> (i32, i32) {
    %c0_i32 = arith.constant 0 : i32
    %c0_i32_0 = arith.constant 0 : i32
    %c0_i32_1 = arith.constant 0 : i32
    return %c0_i32, %c0_i32_0 : i32, i32
  }
  func.func @transform_7(%arg0: i32) -> (i32, i32) {
    %c0_i32 = arith.constant 0 : i32
    %c0_i32_0 = arith.constant 0 : i32
    return %c0_i32, %arg0 : i32, i32
  }
}

</mosaic_0001>

<bundles_post_ra>
// kernel: _value_network_forward_impl.1
= control target key start
LH: loop header
LB: loop body
LE: loop exit
PB: predicated region body
PF: predicated region fallthrough
CT: control target
= control target key end

     0   :  { %vm100_vm0 = vcmask 130048   ;;  %v740_v3 = vmov 0   ;;  %vm366_vm2 = vcmask 523264   ;;  %s993_s0 = inlined_call_operand.vmem [shape: f32[128,16], index: 0, kind: input, shape index: {}]   ;;  %s994_s1 = inlined_call_operand.vmem [shape: f32[64,16], index: 1, kind: input, shape index: {}]   ;;  %s995_s2 = inlined_call_operand.vmem [shape: f32[64,1], index: 2, kind: input, shape index: {}]   ;;  %s996_s4 = inlined_call_operand.vmem [shape: f32[64,1], index: 4, kind: input, shape index: {}]   ;;  %s997_s5 = inlined_call_operand.vmem [shape: f32[64,1], index: 5, kind: input, shape index: {}]   ;;  %s998_s3 = inlined_call_operand.vmem [shape: bf16[64,64], index: 3, kind: input, shape index: {}]   ;;  %s999_s6 = inlined_call_operand.<no memory space> [shape: f32[1,1], index: 6, kind: input, shape index: {}]   ;;  %s1000_s7 = inlined_call_operand.vmem [shape: f32[1,128], index: 7, kind: output, shape index: {}]  }
   0x1   :  { %v28_v0 = vld [vmem:[%s993_s0] sm:$0xff]  ;;  %v29_v1 = vld [vmem:[%s993_s0 + $0x8] sm:$0xff]  ;;  %vm789_vm1 = vmpackc.low %vm100_vm0, %vm100_vm0  ;;  %702 = vset.pattern.permute.xlu0 %v740_v3  ;;  %703 = vset.pattern.permute.xlu1 %v740_v3 }
   0x2   :  { %v653_v4 = vpack.c.bf16 %v29_v1, %v28_v0  ;;  %v30_v5 = vld [vmem:[%s993_s0 + $0x10] sm:$0xff]  ;;  %v31_v6 = vld [vmem:[%s993_s0 + $0x18] sm:$0xff]  ;;  %v44_v8 = vld [vmem:[%s994_s1] sm:$0xff] }
   0x3   :  { %v659_v7 = vpack.c.bf16 %v31_v6, %v30_v5  ;;  %v32_v9 = vld [vmem:[%s993_s0 + $0x20] sm:$0xff]  ;;  %v33_v10 = vld [vmem:[%s993_s0 + $0x28] sm:$0xff]  ;;  %625 = vmatprep.mubr.msk.f32.mxu0 %vm100_vm0, %v44_v8  ;;  %v54_v12 = vld [vmem:[%s995_s2 + $0x10] sm:$0xff] }
   0x4   :  { %655 = vmatprep.subr.msk.bf16.mxu0 %vm789_vm1, %v653_v4  ;;  %v52_v11 = vld [vmem:[%s995_s2] sm:$0xff]  ;;  %v665_v13 = vpack.c.bf16 %v33_v10, %v32_v9  ;;  %72 = vperm.xlu1 %703, %v54_v12   ;;  %v53_v14 = vld [vmem:[%s995_s2 + $0x8] sm:$0xff]  ;;  %v55_v15 = vld [vmem:[%s995_s2 + $0x18] sm:$0xff] }
   0x5   :  { %658 = vmatpush3.bf16.xpose.msk.msra.mxu0 %vm789_vm1, %v653_v4  ;;  %62 = vperm.xlu0 %702, %v52_v11   ;;  %v34_v16 = vld [vmem:[%s993_s0 + $0x30] sm:$0xff]  ;;  %v35_v17 = vld [vmem:[%s993_s0 + $0x38] sm:$0xff]  ;;  %v56_v18 = vld [vmem:[%s995_s2 + $0x20] sm:$0xff] }
   0x6   :  { %661 = vmatprep.subr.msk.bf16.mxu0 %vm789_vm1, %v659_v7  ;;  %v57_v19 = vld [vmem:[%s995_s2 + $0x28] sm:$0xff]  ;;  %v671_v20 = vpack.c.bf16 %v35_v17, %v34_v16  ;;  %v58_v21 = vld [vmem:[%s995_s2 + $0x30] sm:$0xff]  ;;  %v59_v22 = vld [vmem:[%s995_s2 + $0x38] sm:$0xff] }
   0x7   :  { %v36_v23 = vld [vmem:[%s993_s0 + $0x40] sm:$0xff]  ;;  %v37_v24 = vld [vmem:[%s993_s0 + $0x48] sm:$0xff]  ;;  %v300_v28 = vld [vmem:[%s996_s4 + $0x10] sm:$0xff] }
   0x8   :  { %77 = vperm.xlu1 %703, %v55_v15   ;;  %v298_v25 = vld [vmem:[%s996_s4] sm:$0xff]  ;;  %v299_v26 = vld [vmem:[%s996_s4 + $0x8] sm:$0xff]  ;;  %v677_v27 = vpack.c.bf16 %v37_v24, %v36_v23  ;;  %v301_v29 = vld [vmem:[%s996_s4 + $0x18] sm:$0xff] }
   0x9   :  { %67 = vperm.xlu0 %702, %v53_v14   ;;  %v38_v30 = vld [vmem:[%s993_s0 + $0x50] sm:$0xff]  ;;  %v39_v31 = vld [vmem:[%s993_s0 + $0x58] sm:$0xff]  ;;  %v302_v32 = vld [vmem:[%s996_s4 + $0x20] sm:$0xff] }
   0xa   :  { %v303_v33 = vld [vmem:[%s996_s4 + $0x28] sm:$0xff]  ;;  %v683_v34 = vpack.c.bf16 %v39_v31, %v38_v30  ;;  %v304_v35 = vld [vmem:[%s996_s4 + $0x30] sm:$0xff]  ;;  %v305_v36 = vld [vmem:[%s996_s4 + $0x38] sm:$0xff] }
   0xb   :  { %v40_v37 = vld [vmem:[%s993_s0 + $0x60] sm:$0xff]  ;;  %v41_v38 = vld [vmem:[%s993_s0 + $0x68] sm:$0xff]  ;;  %v454_v42 = vld [vmem:[%s997_s5 + $0x10] sm:$0xff] }
   0xc   :  { %87 = vperm.xlu1 %703, %v57_v19   ;;  %v452_v39 = vld [vmem:[%s997_s5] sm:$0xff]  ;;  %v453_v40 = vld [vmem:[%s997_s5 + $0x8] sm:$0xff]  ;;  %v689_v41 = vpack.c.bf16 %v41_v38, %v40_v37  ;;  %v455_v43 = vld [vmem:[%s997_s5 + $0x18] sm:$0xff] }
   0xd   :  { %664 = vmatpush3.bf16.xpose.msk.msra.mxu0 %vm789_vm1, %v659_v7  ;;  %82 = vperm.xlu0 %702, %v56_v18   ;;  %v42_v44 = vld [vmem:[%s993_s0 + $0x70] sm:$0xff]  ;;  %v43_v45 = vld [vmem:[%s993_s0 + $0x78] sm:$0xff]  ;;  %v456_v46 = vld [vmem:[%s997_s5 + $0x20] sm:$0xff] }
   0xe   :  { %667 = vmatprep.subr.msk.bf16.mxu0 %vm789_vm1, %v665_v13  ;;  %v457_v47 = vld [vmem:[%s997_s5 + $0x28] sm:$0xff]  ;;  %v695_v48 = vpack.c.bf16 %v43_v45, %v42_v44  ;;  %v458_v49 = vld [vmem:[%s997_s5 + $0x30] sm:$0xff]  ;;  %v459_v50 = vld [vmem:[%s997_s5 + $0x38] sm:$0xff] }
   0xf   :  { %v45_v51 = vld [vmem:[%s994_s1 + $0x8] sm:$0xff]  ;;  %v46_v52 = vld [vmem:[%s994_s1 + $0x10] sm:$0xff]  ;;  %v47_v53 = vld [vmem:[%s994_s1 + $0x18] sm:$0xff] }
  0x10   :  { %97 = vperm.xlu1 %703, %v59_v22   ;;  %v48_v54 = vld [vmem:[%s994_s1 + $0x20] sm:$0xff]  ;;  %v49_v55 = vld [vmem:[%s994_s1 + $0x28] sm:$0xff]  ;;  %v50_v56 = vld [vmem:[%s994_s1 + $0x30] sm:$0xff] }
  0x11   :  { %92 = vperm.xlu0 %702, %v58_v21   ;;  %v51_v57 = vld [vmem:[%s994_s1 + $0x38] sm:$0xff]  ;;  %v704_v58 = vld [vmem:[%s998_s3] sm:$0xff]   ;;  %v705_v31 = vld [vmem:[%s998_s3 + $0x8] sm:$0xff]  }
  0x12   :  { %645 = vmatprep.mubr.msk.bf16.mxu1 %vm366_vm2, %v704_v58 }
  0x14   :  { %313 = vperm.xlu1 %703, %v299_v26  }
  0x15   :  { %670 = vmatpush3.bf16.xpose.msk.msra.mxu0 %vm789_vm1, %v665_v13  ;;  %308 = vperm.xlu0 %702, %v298_v25  }
  0x16   :  { %673 = vmatprep.subr.msk.bf16.mxu0 %vm789_vm1, %v671_v20 }
  0x18   :  { %323 = vperm.xlu1 %703, %v301_v29  }
  0x19   :  { %318 = vperm.xlu0 %702, %v300_v28  }
  0x1c   :  { %333 = vperm.xlu1 %703, %v303_v33   ;;  %v707_v33 = vld [vmem:[%s998_s3 + $0x18] sm:$0xff]  }
  0x1d   :  { %676 = vmatpush3.bf16.xpose.msk.msra.mxu0 %vm789_vm1, %v671_v20  ;;  %328 = vperm.xlu0 %702, %v302_v32   ;;  %v706_v32 = vld [vmem:[%s998_s3 + $0x10] sm:$0xff]  }
  0x1e   :  { %679 = vmatprep.subr.msk.bf16.mxu0 %vm789_vm1, %v677_v27 }
  0x20   :  { %343 = vperm.xlu1 %703, %v305_v36  }
  0x21   :  { %338 = vperm.xlu0 %702, %v304_v35  }
  0x24   :  { %467 = vperm.xlu1 %703, %v453_v40  }
  0x25   :  { %682 = vmatpush3.bf16.xpose.msk.msra.mxu0 %vm789_vm1, %v677_v27  ;;  %462 = vperm.xlu0 %702, %v452_v39  }
  0x26   :  { %685 = vmatprep.subr.msk.bf16.mxu0 %vm789_vm1, %v683_v34 }
  0x28   :  { %477 = vperm.xlu1 %703, %v455_v43  }
  0x29   :  { %472 = vperm.xlu0 %702, %v454_v42  }
  0x2c   :  { %487 = vperm.xlu1 %703, %v457_v47  }
  0x2d   :  { %688 = vmatpush3.bf16.xpose.msk.msra.mxu0 %vm789_vm1, %v683_v34  ;;  %482 = vperm.xlu0 %702, %v456_v46  }
  0x2e   :  { %691 = vmatprep.subr.msk.bf16.mxu0 %vm789_vm1, %v689_v41 }
  0x30   :  { %497 = vperm.xlu1 %703, %v459_v50  }
  0x31   :  { %492 = vperm.xlu0 %702, %v458_v49  }
  0x35   :  { %694 = vmatpush3.bf16.xpose.msk.msra.mxu0 %vm789_vm1, %v689_v41 }
  0x36   :  { %697 = vmatprep.subr.msk.bf16.mxu0 %vm789_vm1, %v695_v48 }
  0x3d   :  { %700 = vmatpush3.bf16.xpose.msk.msra.mxu0 %vm789_vm1, %v695_v48 }
  0x44   :  { %626 = vmatmul.mubr.msk.f32.vlgmr.msra.gmra.mrb[0].mxu0 %vm100_vm0, %v45_v51 }
  0x45   :  { %628 = vmatprep.mubr.msk.f32.mxu0 %vm100_vm0, %v46_v52 }
  0x48   :  { %629 = vmatmul.mubr.msk.f32.gmra.mrb[2].mxu0 %vm100_vm0, %v47_v53 }
  0x49   :  { %631 = vmatprep.mubr.msk.f32.mxu0 %vm100_vm0, %v48_v54 }
  0x4c   :  { %632 = vmatmul.mubr.msk.f32.gmra.mrb[4].mxu0 %vm100_vm0, %v49_v55 }
  0x4d   :  { %634 = vmatprep.mubr.msk.f32.mxu0 %vm100_vm0, %v50_v56 }
  0x50   :  { %635 = vmatmul.mubr.msk.f32.gmra.mrb[6].mxu0 %vm100_vm0, %v51_v57 }
  0x83   :  { %v73_v60 = vpop.permute.xlu1 %72 }
  0x84   :  { %v63_v59 = vpop.permute.xlu0 %62 }
  0x87   :  { %v78_v62 = vpop.permute.xlu1 %77 }
  0x88   :  { %v68_v61 = vpop.permute.xlu0 %67 }
  0x8b   :  { %v88_v6 = vpop.permute.xlu1 %87 }
  0x8c   :  { %v83_v8 = vpop.permute.xlu0 %82 }
  0x8f   :  { %v98_v13 = vpop.permute.xlu1 %97 }
  0x90   :  { %v93_v16 = vpop.permute.xlu0 %92 }
  0x93   :  { %v314_v35 = vpop.permute.xlu1 %313 }
  0x94   :  { %v309_v34 = vpop.permute.xlu0 %308 }
  0x97   :  { %v324_v37 = vpop.permute.xlu1 %323 }
  0x98   :  { %v319_v36 = vpop.permute.xlu0 %318 }
  0x9b   :  { %v334_v39 = vpop.permute.xlu1 %333 }
  0x9c   :  { %v329_v38 = vpop.permute.xlu0 %328 }
  0x9f   :  { %v344_v47 = vpop.permute.xlu1 %343 }
  0xa0   :  { %v339_v43 = vpop.permute.xlu0 %338 }
  0xa3   :  { %v468_v54 = vpop.permute.xlu1 %467 }
  0xa4   :  { %v463_v50 = vpop.permute.xlu0 %462 }
 0x117   :  { %v627_v63 = vpop.f32.mrb[0].mxu0 }
 0x118   :  { %v245_v0 = vadd.f32 %v627_v63, %v68_v61  ;;  %v239_v1 = vpop.f32.mrb[1].mxu0  ;;  %v473_v61 = vpop.permute.xlu0 %472 }
 0x119   :  { %v240_v2 = vadd.f32 %v239_v1, %v63_v59 }
 0x11a   :  { %708 = vtanh.f32 %v245_v0  ;;  %v478_v0 = vpop.permute.xlu1 %477 }
 0x11b   :  { %710 = vtanh.f32 %v240_v2  ;;  %v630_v3 = vpop.f32.mrb[2].mxu0 }
 0x11c   :  { %v255_v4 = vadd.f32 %v630_v3, %v78_v62  ;;  %v249_v5 = vpop.f32.mrb[3].mxu0 }
 0x11d   :  { %v250_v7 = vadd.f32 %v249_v5, %v73_v60 }
 0x11e   :  { %712 = vtanh.f32 %v255_v4 }
 0x11f   :  { %714 = vtanh.f32 %v250_v7  ;;  %v633_v9 = vpop.f32.mrb[4].mxu0 }
 0x120   :  { %v265_v10 = vadd.f32 %v633_v9, %v88_v6  ;;  %v259_v11 = vpop.f32.mrb[5].mxu0  ;;  %v483_v6 = vpop.permute.xlu0 %482 }
 0x121   :  { %v260_v12 = vadd.f32 %v259_v11, %v83_v8 }
 0x122   :  { %716 = vtanh.f32 %v265_v10  ;;  %v488_v10 = vpop.permute.xlu1 %487 }
 0x123   :  { %718 = vtanh.f32 %v260_v12  ;;  %v636_v14 = vpop.f32.mrb[6].mxu0 }
 0x124   :  { %v709_v15 = vpop.eup %708  ;;  %v275_v17 = vadd.f32 %v636_v14, %v98_v13  ;;  %v269_v18 = vpop.f32.mrb[7].mxu0 }
 0x125   :  { %v711_v19 = vpop.eup %710  ;;  %v270_v20 = vadd.f32 %v269_v18, %v93_v16  ;;  %v493_v18 = vpop.permute.xlu0 %492 }
 0x126   :  { %720 = vtanh.f32 %v275_v17  ;;  %v286_v21 = vpack.c.bf16 %v709_v15, %v711_v19 }
 0x127   :  { %722 = vtanh.f32 %v270_v20 }
 0x128   :  { %v713_v22 = vpop.eup %712  ;;  %637 = vmatprep.subr.bf16.mxu1 %v286_v21 }
 0x129   :  { %v715_v23 = vpop.eup %714  ;;  %638 = vmatpush3.bf16.msra.mxu1 %v286_v21  ;;  %v498_v21 = vpop.permute.xlu1 %497 }
 0x12a   :  { %v287_v24 = vpack.c.bf16 %v713_v22, %v715_v23 }
 0x12c   :  { %v717_v25 = vpop.eup %716  ;;  %639 = vmatprep.subr.bf16.mxu1 %v287_v24 }
 0x12d   :  { %v719_v26 = vpop.eup %718  ;;  %640 = vmatpush3.bf16.msra.mxu1 %v287_v24 }
 0x12e   :  { %v288_v27 = vpack.c.bf16 %v717_v25, %v719_v26 }
 0x130   :  { %v721_v28 = vpop.eup %720  ;;  %641 = vmatprep.subr.bf16.mxu1 %v288_v27 }
 0x131   :  { %v723_v29 = vpop.eup %722  ;;  %642 = vmatpush3.bf16.msra.mxu1 %v288_v27 }
 0x132   :  { %v289_v30 = vpack.c.bf16 %v721_v28, %v723_v29 }
 0x134   :  { %643 = vmatprep.subr.bf16.mxu1 %v289_v30 }
 0x135   :  { %644 = vmatpush3.bf16.msra.mxu1 %v289_v30  ;;  %v522_v30 = vstv %s999_s6 }
 0x138   :  { %646 = vmatmul.mubr.msk.bf16.vlgmr.msra.gmra.mrb[0].mxu1 %vm366_vm2, %v705_v31 }
 0x139   :  { %649 = vmatprep.mubr.msk.bf16.mxu1 %vm366_vm2, %v706_v32 }
 0x140   :  { %650 = vmatmul.mubr.msk.bf16.gmra.mrb[4].mxu1 %vm366_vm2, %v707_v33 }
 0x20b   :  { %v647_v40 = vpop.f32.mrb[0].mxu1 }
 0x20c   :  { %v422_v41 = vadd.f32 %v647_v40, %v319_v36  ;;  %v413_v42 = vpop.f32.mrb[1].mxu1 }
 0x20d   :  { %v414_v44 = vadd.f32 %v413_v42, %v309_v34  ;;  %v648_v45 = vpop.f32.mrb[2].mxu1 }
 0x20e   :  { %v416_v46 = vpop.f32.mrb[3].mxu1  ;;  %v425_v48 = vadd.f32 %v648_v45, %v324_v37 }
 0x20f   :  { %724 = vtanh.f32 %v414_v44  ;;  %v417_v49 = vadd.f32 %v416_v46, %v314_v35 }
 0x210   :  { %726 = vtanh.f32 %v422_v41 }
 0x211   :  { %728 = vtanh.f32 %v417_v49 }
 0x212   :  { %730 = vtanh.f32 %v425_v48 }
 0x213   :  { %v651_v51 = vpop.f32.mrb[4].mxu1 }
 0x214   :  { %v438_v52 = vadd.f32 %v651_v51, %v339_v43  ;;  %v429_v53 = vpop.f32.mrb[5].mxu1 }
 0x215   :  { %v430_v55 = vadd.f32 %v429_v53, %v329_v38  ;;  %v652_v56 = vpop.f32.mrb[6].mxu1 }
 0x216   :  { %v432_v57 = vpop.f32.mrb[7].mxu1  ;;  %v441_v58 = vadd.f32 %v652_v56, %v344_v47 }
 0x217   :  { %732 = vtanh.f32 %v430_v55  ;;  %v433_v59 = vadd.f32 %v432_v57, %v334_v39 }
 0x218   :  { %734 = vtanh.f32 %v438_v52 }
 0x219   :  { %v725_v60 = vpop.eup %724  ;;  %736 = vtanh.f32 %v433_v59 }
 0x21a   :  { %v727_v62 = vpop.eup %726  ;;  %738 = vtanh.f32 %v441_v58  ;;  %v500_v1 = vmul.f32 %v725_v60, %v463_v50 }
 0x21b   :  { %v729_v63 = vpop.eup %728  ;;  %v502_v4 = vmul.f32 %v727_v62, %v473_v61 }
 0x21c   :  { %v501_v2 = vmul.f32 %v729_v63, %v468_v54  ;;  %v731_v3 = vpop.eup %730 }
 0x21d   :  { %v503_v7 = vmul.f32 %v731_v3, %v478_v0 }
 0x21e   :  { %v508_v5 = vadd.f32 %v501_v2, %v500_v1 }
 0x220   :  { %v509_v8 = vadd.f32 %v508_v5, %v502_v4 }
 0x221   :  { %v733_v9 = vpop.eup %732 }
 0x222   :  { %v735_v11 = vpop.eup %734  ;;  %v504_v12 = vmul.f32 %v733_v9, %v483_v6  ;;  %v510_v13 = vadd.f32 %v509_v8, %v503_v7 }
 0x223   :  { %v737_v14 = vpop.eup %736  ;;  %v506_v19 = vmul.f32 %v735_v11, %v493_v18 }
 0x224   :  { %v511_v15 = vadd.f32 %v510_v13, %v504_v12  ;;  %v505_v16 = vmul.f32 %v737_v14, %v488_v10  ;;  %v739_v17 = vpop.eup %738 }
 0x225   :  { %v507_v22 = vmul.f32 %v739_v17, %v498_v21 }
 0x226   :  { %v512_v20 = vadd.f32 %v511_v15, %v505_v16 }
 0x228   :  { %v513_v23 = vadd.f32 %v512_v20, %v506_v19 }
 0x22a   :  { %v514_v24 = vadd.f32 %v513_v23, %v507_v22 }
 0x22c   :  { %v515_v25 = vrot.slane %v514_v24, 4 }
 0x22e   :  { %v516_v26 = vadd.f32 %v515_v25, %v514_v24 }
 0x230   :  { %v517_v27 = vrot.slane %v516_v26, 2 }
 0x232   :  { %v518_v28 = vadd.f32 %v517_v27, %v516_v26 }
 0x234   :  { %v519_v29 = vrot.slane %v518_v28, 1 }
 0x236   :  { %v520_v31 = vadd.f32 %v519_v29, %v518_v28 }
 0x238   :  { %v523_v32 = vadd.f32 %v522_v30, %v520_v31 }
 0x23a   :  { %524 = vst [vmem:[%s1000_s7] sm:$0x1] %v523_v32 }

</bundles_post_ra>
